<compile_context>
chip_gen: v7x
topology: tpu7x:2x2x1
jax: 0.10.0
libtpu: 0.0.40
codegen_flags: <defaults>
</compile_context>

<pallas_src>
import math

import jax
import jax.numpy as jnp
from jax.experimental import pallas as pl
from jax.experimental.pallas import tpu as pltpu

_LANE = 128
_SUBLANE = 8
_VMEM_TILE_BUDGET = 20 * 2**20   # budget for pipeline buffers (headroom under limit)
_VMEM_LIMIT_BYTES = 32 * 2**20   # explicit scoped VMEM limit: safe on v5e/v6e/v7x


def _round_up(n, m):
    return ((n + m - 1) // m) * m


def prepare_decoder_params(weight_t, bias):
    """One-time (parameter-load time) prep of fcG1 params.

    weight_t : [Z, X] float — PyTorch fcG1.weight transposed.
    bias     : [X]    float
    Returns (weight bf16 [Z, Xp], bias f32 [1, Xp], x_dim) with Xp the next
    multiple of 128 (lane-dense stores); padded logit lanes are driven to -1e30
    so they contribute nothing to the softmax denominator.
    """
    Z, X = weight_t.shape
    Xp = _round_up(X, _LANE)
    w = weight_t.astype(jnp.bfloat16)                       # cast ONCE, not per call
    b = bias.reshape(1, -1).astype(jnp.float32)
    if Xp != X:
        w = jnp.pad(w, ((0, 0), (0, Xp - X)))
        b = jnp.pad(b, ((0, 0), (0, Xp - X)), constant_values=-1e30)
    return w, b, X


def _vae_decoder_kernel(z_ref, w_ref, b_ref, out_ref):
    # In-kernel bf16 cast of the activations (hidden under MXU/DMA); bf16 MXU
    # matmul with f32 accumulation; all softmax math in f32.
    z_bf = z_ref[...].astype(jnp.bfloat16)
    logits = jnp.dot(z_bf, w_ref[...], preferred_element_type=jnp.float32)
    logits = logits + b_ref[...]                            # bias [1, Xp] broadcasts

    # Numerically stable softmax along the last dim; exact normalization
    # (memory-bound kernel -> the divide is free, and rows sum to 1 exactly).
    m = jnp.max(logits, axis=-1, keepdims=True)
    e = jnp.exp(logits - m)
    denom = jnp.sum(e, axis=-1, keepdims=True)
    out_ref[...] = (e / denom).astype(out_ref.dtype)


def _choose_block_rows(R, Z, Xp, out_bytes, requested):
    """Pick a row tile: big (DMA-efficient), VMEM-budgeted, multiple of 8, and
    producing >= 2 grid steps when possible so v7x can use both TensorCores."""
    per_row = 2 * Z * 4 + 2 * Xp * out_bytes + 4 * Xp * 4   # z/out dbl-buf + f32 temps
    fixed = 2 * (Z * Xp * 2 + Xp * 4)                       # weight+bias (worst case 2 bufs)
    cap = max((_VMEM_TILE_BUDGET - fixed) // per_row, _SUBLANE)
    br = min(requested, cap)
    br = max(_SUBLANE, (br // _SUBLANE) * _SUBLANE)
    if R >= 2 * _SUBLANE:
        # Guarantee at least two grid steps (v7x dual-TC); no-op on v5e/v6e.
        br = min(br, _round_up(pl.cdiv(R, 2), _SUBLANE))
    br = min(br, _round_up(R, _SUBLANE))
    return max(br, _SUBLANE)


def vae_decoder_forward(z, weight_t, bias, *, x_dim=None, block_rows=512,
                        out_dtype=jnp.float32):
    """VAEdecoder.forward (entMax=False): softmax(z @ W^T + b, axis=-1).

    z        : [..., Z] f32 — leading dims (e.g. [T, B] of the VRNN sequence)
               are folded into one row axis so the weight is DMA'd once per call.
               Prefer one folded call over per-timestep calls.
    weight_t : [Z, Xp] — ideally the bf16, lane-padded output of
               prepare_decoder_params; raw f32 [Z, X] is accepted (prepped per
               call — avoid inside a loop).
    bias     : [1, Xp] f32 (prepared) or raw [X].
    x_dim    : original X if the params were lane-padded.
    """
    *lead, Z = z.shape
    Zw, Xp = weight_t.shape
    assert Z == Zw, "z feature dim must match weight input dim"

    # Convenience path for raw params; in a VRNN loop do this once outside.
    if weight_t.dtype != jnp.bfloat16 or Xp % _LANE != 0 or bias.ndim != 2:
        weight_t, bias, inferred_x = prepare_decoder_params(weight_t, bias)
        Xp = weight_t.shape[1]
        if x_dim is None:
            x_dim = inferred_x
    if x_dim is None:
        x_dim = Xp

    R = math.prod(lead) if lead else 1
    z2 = z.reshape(R, Z)                     # stays f32; cast happens in-kernel

    out_bytes = jax.dtypes.canonicalize_dtype(out_dtype).itemsize
    br = _choose_block_rows(R, Z, Xp, out_bytes, block_rows)
    # Partial last block (R % br != 0): OOB rows read garbage, OOB writes are
    # masked; rows are independent, so no pad / trailing slice is needed.
    n_tiles = pl.cdiv(R, br)

    cost = pl.CostEstimate(
        flops=2 * R * Z * Xp,
        transcendentals=R * Xp,
        bytes_accessed=R * Z * 4 + Z * Xp * 2 + Xp * 4 + R * Xp * out_bytes,
    )
    cparams = pltpu.CompilerParams(
        dimension_semantics=("parallel",),   # lets v7x shard row tiles over 2 TCs
        vmem_limit_bytes=_VMEM_LIMIT_BYTES,
    )

    def run(param_bufs):
        # Weight/bias index_map is constant across the grid -> single buffer is
        # enough; frees Z*Xp*2 bytes of VMEM (matters on v7x / large X).
        pm = {"pipeline_mode": pl.Buffered(param_bufs)} if param_bufs != 2 else {}
        return pl.pallas_call(
            _vae_decoder_kernel,
            out_shape=jax.ShapeDtypeStruct((R, Xp), out_dtype),
            grid=(n_tiles,),
            in_specs=[
                pl.BlockSpec((br, Z), lambda i: (i, 0)),
                pl.BlockSpec((Z, Xp), lambda i: (0, 0), **pm),   # VMEM-resident weight
                pl.BlockSpec((1, Xp), lambda i: (0, 0), **pm),   # VMEM-resident bias
            ],
            out_specs=pl.BlockSpec((br, Xp), lambda i: (i, 0)),
            compiler_params=cparams,
            cost_estimate=cost,
        )(z2, weight_t, bias)

    try:
        out = run(1)
    except Exception:
        # This jax version rejects single-buffered BlockSpecs -> default (2).
        out = run(2)

    if x_dim != Xp:
        out = out[:, :x_dim]
    out_shape = (*lead, x_dim) if lead else (x_dim,)
    return out.reshape(out_shape)


def reference_forward(z, weight_t, bias):
    logits = z @ weight_t + bias[None, :]
    return jax.nn.softmax(logits, axis=-1)


if __name__ == "__main__":
    B, T, Z_DIM, X_DIM = 8, 32, 128, 256

    key = jax.random.PRNGKey(0)
    kz, kzs, kw, kb = jax.random.split(key, 4)

    # Deterministic params mimicking nn.Linear's uniform(-1/sqrt(in), 1/sqrt(in)).
    bound = 1.0 / math.sqrt(Z_DIM)
    weight_t = jax.random.uniform(
        kw, (Z_DIM, X_DIM), minval=-bound, maxval=bound, dtype=jnp.float32
    )  # PyTorch weight is [x_dim, z_dim]; we keep its transpose [z_dim, x_dim].
    bias = jax.random.uniform(
        kb, (X_DIM,), minval=-bound, maxval=bound, dtype=jnp.float32
    )

    # Cast/pad fcG1 params ONCE (parameter-load time), not per forward call.
    w_bf, b2, x_dim = prepare_decoder_params(weight_t, bias)

    # --- Small single batch (grid collapses to 1 tile) ---
    z_small = jax.random.normal(kz, (B, Z_DIM), dtype=jnp.float32)
    out_small = jax.block_until_ready(
        vae_decoder_forward(z_small, w_bf, b2, x_dim=x_dim)
    )
    ref_small = reference_forward(z_small, weight_t, bias)
    assert out_small.shape == (B, X_DIM)
    assert jnp.allclose(out_small, ref_small, atol=1e-2, rtol=5e-2), "small mismatch"
    assert jnp.allclose(jnp.sum(out_small, axis=-1), 1.0, atol=1e-3)

    # --- VRNN-style [T, B, Z] folded into one gridded call (weight resident) ---
    z_seq = jax.random.normal(kzs, (T, B, Z_DIM), dtype=jnp.float32)
    out_seq = jax.block_until_ready(
        vae_decoder_forward(z_seq, w_bf, b2, x_dim=x_dim)
    )
    ref_seq = reference_forward(
        z_seq.reshape(-1, Z_DIM), weight_t, bias
    ).reshape(T, B, X_DIM)
    assert out_seq.shape == (T, B, X_DIM)
    assert jnp.allclose(out_seq, ref_seq, atol=1e-2, rtol=5e-2), "gridded mismatch"
    assert jnp.allclose(jnp.sum(out_seq, axis=-1), 1.0, atol=1e-3)

    # --- Optional bf16 output (halves the dominant store traffic) ---
    out_bf16 = jax.block_until_ready(
        vae_decoder_forward(z_seq, w_bf, b2, x_dim=x_dim, out_dtype=jnp.bfloat16)
    )
    assert out_bf16.dtype == jnp.bfloat16
    assert jnp.allclose(
        jnp.sum(out_bf16.astype(jnp.float32), axis=-1), 1.0, atol=2e-2
    )

    print("KERNEL_OK")
</pallas_src>

<mosaic_0001>
module attributes {stable_mosaic.version = 11 : i64} {
  func.func @_vae_decoder_kernel(%arg0: i32, %arg1: memref<8x128xf32, #tpu.memory_space<vmem>>, %arg2: memref<128x256xbf16, #tpu.memory_space<vmem>>, %arg3: memref<1x256xf32, #tpu.memory_space<vmem>>, %arg4: memref<8x256xf32, #tpu.memory_space<vmem>>) attributes {dimension_semantics = [#tpu.dimension_semantics<parallel>], iteration_bounds = array<i64: 1>, scalar_prefetch = 0 : i64, scratch_operands = 0 : i64, tpu.core_type = #tpu.core_type<tc>, window_params = [{transform_indices = @transform_0, window_bounds = array<i64: 8, 128>}, {pipeline_mode = #tpu.pipeline_mode<synchronous>, transform_indices = @transform_1, window_bounds = array<i64: 128, 256>}, {pipeline_mode = #tpu.pipeline_mode<synchronous>, transform_indices = @transform_2, window_bounds = array<i64: 1, 256>}, {transform_indices = @transform_3, window_bounds = array<i64: 8, 256>}]} {
    %c0 = arith.constant 0 : index
    %c0_0 = arith.constant 0 : index
    %0 = vector.load %arg1[%c0, %c0_0] : memref<8x128xf32, #tpu.memory_space<vmem>>, vector<8x128xf32>
    %1 = arith.truncf %0 : vector<8x128xf32> to vector<8x128xbf16>
    %c0_1 = arith.constant 0 : index
    %c0_2 = arith.constant 0 : index
    %2 = vector.load %arg2[%c0_1, %c0_2] : memref<128x256xbf16, #tpu.memory_space<vmem>>, vector<128x256xbf16>
    %cst = arith.constant dense<0.000000e+00> : vector<8x256xf32>
    %3 = tpu.matmul %1, %2, %cst {dimension_numbers = #tpu.dot_dimension_numbers<[1], [0], [0], [1], [0, 0, 1, 1], [], []>} : vector<8x128xbf16>, vector<128x256xbf16>, vector<8x256xf32> -> vector<8x256xf32>
    %c0_3 = arith.constant 0 : index
    %c0_4 = arith.constant 0 : index
    %4 = vector.load %arg3[%c0_3, %c0_4] : memref<1x256xf32, #tpu.memory_space<vmem>>, vector<1x256xf32>
    %5 = vector.broadcast %4 : vector<1x256xf32> to vector<8x256xf32>
    %6 = arith.addf %3, %5 : vector<8x256xf32>
    %cst_5 = arith.constant dense<0xFF800000> : vector<8xf32>
    %7 = vector.multi_reduction <maximumf>, %6, %cst_5 [1] : vector<8x256xf32> to vector<8xf32>
    %8 = vector.shape_cast %7 : vector<8xf32> to vector<8x1xf32>
    %9 = vector.broadcast %8 : vector<8x1xf32> to vector<8x256xf32>
    %10 = arith.subf %6, %9 : vector<8x256xf32>
    %11 = math.exp %10 : vector<8x256xf32>
    %cst_6 = arith.constant dense<0.000000e+00> : vector<8xf32>
    %12 = vector.multi_reduction <add>, %11, %cst_6 [1] : vector<8x256xf32> to vector<8xf32>
    %13 = vector.shape_cast %12 : vector<8xf32> to vector<8x1xf32>
    %14 = vector.broadcast %13 : vector<8x1xf32> to vector<8x256xf32>
    %15 = arith.divf %11, %14 : vector<8x256xf32>
    %c0_7 = arith.constant 0 : index
    %c0_8 = arith.constant 0 : index
    %16 = vector.load %arg4[%c0_7, %c0_8] : memref<8x256xf32, #tpu.memory_space<vmem>>, vector<8x256xf32>
    tpu.vector_store %arg4[%c0_7, %c0_8], %15 {strides = array<i32>} : memref<8x256xf32, #tpu.memory_space<vmem>>, vector<8x256xf32>,
    return
  }
  func.func @transform_0(%arg0: i32) -> (i32, i32) {
    %c0_i32 = arith.constant 0 : i32
    %c0_i32_0 = arith.constant 0 : i32
    return %arg0, %c0_i32 : i32, i32
  }
  func.func @transform_1(%arg0: i32) -> (i32, i32) {
    %c0_i32 = arith.constant 0 : i32
    %c0_i32_0 = arith.constant 0 : i32
    %c0_i32_1 = arith.constant 0 : i32
    return %c0_i32, %c0_i32_0 : i32, i32
  }
  func.func @transform_2(%arg0: i32) -> (i32, i32) {
    %c0_i32 = arith.constant 0 : i32
    %c0_i32_0 = arith.constant 0 : i32
    %c0_i32_1 = arith.constant 0 : i32
    return %c0_i32, %c0_i32_0 : i32, i32
  }
  func.func @transform_3(%arg0: i32) -> (i32, i32) {
    %c0_i32 = arith.constant 0 : i32
    %c0_i32_0 = arith.constant 0 : i32
    return %arg0, %c0_i32 : i32, i32
  }
}

module attributes {stable_mosaic.version = 11 : i64} {
  func.func @_vae_decoder_kernel(%arg0: i32, %arg1: memref<8x128xf32, #tpu.memory_space<vmem>>, %arg2: memref<128x256xbf16, #tpu.memory_space<vmem>>, %arg3: memref<1x256xf32, #tpu.memory_space<vmem>>, %arg4: memref<8x256xf32, #tpu.memory_space<vmem>>) attributes {dimension_semantics = [#tpu.dimension_semantics<parallel>], iteration_bounds = array<i64: 1>, scalar_prefetch = 0 : i64, scratch_operands = 0 : i64, tpu.core_type = #tpu.core_type<tc>, window_params = [{transform_indices = @transform_0, window_bounds = array<i64: 8, 128>}, {pipeline_mode = #tpu.pipeline_mode<synchronous>, transform_indices = @transform_1, window_bounds = array<i64: 128, 256>}, {pipeline_mode = #tpu.pipeline_mode<synchronous>, transform_indices = @transform_2, window_bounds = array<i64: 1, 256>}, {transform_indices = @transform_3, window_bounds = array<i64: 8, 256>}]} {
    %c0 = arith.constant 0 : index
    %c0_0 = arith.constant 0 : index
    %0 = vector.load %arg1[%c0, %c0_0] : memref<8x128xf32, #tpu.memory_space<vmem>>, vector<8x128xf32>
    %1 = arith.truncf %0 : vector<8x128xf32> to vector<8x128xbf16>
    %c0_1 = arith.constant 0 : index
    %c0_2 = arith.constant 0 : index
    %2 = vector.load %arg2[%c0_1, %c0_2] : memref<128x256xbf16, #tpu.memory_space<vmem>>, vector<128x256xbf16>
    %cst = arith.constant dense<0.000000e+00> : vector<8x256xf32>
    %3 = tpu.matmul %1, %2, %cst {dimension_numbers = #tpu.dot_dimension_numbers<[1], [0], [0], [1], [0, 0, 1, 1], [], []>} : vector<8x128xbf16>, vector<128x256xbf16>, vector<8x256xf32> -> vector<8x256xf32>
    %c0_3 = arith.constant 0 : index
    %c0_4 = arith.constant 0 : index
    %4 = vector.load %arg3[%c0_3, %c0_4] : memref<1x256xf32, #tpu.memory_space<vmem>>, vector<1x256xf32>
    %5 = vector.broadcast %4 : vector<1x256xf32> to vector<8x256xf32>
    %6 = arith.addf %3, %5 : vector<8x256xf32>
    %cst_5 = arith.constant dense<0xFF800000> : vector<8xf32>
    %7 = vector.multi_reduction <maximumf>, %6, %cst_5 [1] : vector<8x256xf32> to vector<8xf32>
    %8 = vector.shape_cast %7 : vector<8xf32> to vector<8x1xf32>
    %9 = vector.broadcast %8 : vector<8x1xf32> to vector<8x256xf32>
    %10 = arith.subf %6, %9 : vector<8x256xf32>
    %11 = math.exp %10 : vector<8x256xf32>
    %cst_6 = arith.constant dense<0.000000e+00> : vector<8xf32>
    %12 = vector.multi_reduction <add>, %11, %cst_6 [1] : vector<8x256xf32> to vector<8xf32>
    %13 = vector.shape_cast %12 : vector<8xf32> to vector<8x1xf32>
    %14 = vector.broadcast %13 : vector<8x1xf32> to vector<8x256xf32>
    %15 = arith.divf %11, %14 : vector<8x256xf32>
    %c0_7 = arith.constant 0 : index
    %c0_8 = arith.constant 0 : index
    %16 = vector.load %arg4[%c0_7, %c0_8] : memref<8x256xf32, #tpu.memory_space<vmem>>, vector<8x256xf32>
    tpu.vector_store %arg4[%c0_7, %c0_8], %15 {strides = array<i32>} : memref<8x256xf32, #tpu.memory_space<vmem>>, vector<8x256xf32>,
    return
  }
  func.func @transform_0(%arg0: i32) -> (i32, i32) {
    %c0_i32 = arith.constant 0 : i32
    %c0_i32_0 = arith.constant 0 : i32
    return %arg0, %c0_i32 : i32, i32
  }
  func.func @transform_1(%arg0: i32) -> (i32, i32) {
    %c0_i32 = arith.constant 0 : i32
    %c0_i32_0 = arith.constant 0 : i32
    %c0_i32_1 = arith.constant 0 : i32
    return %c0_i32, %c0_i32_0 : i32, i32
  }
  func.func @transform_2(%arg0: i32) -> (i32, i32) {
    %c0_i32 = arith.constant 0 : i32
    %c0_i32_0 = arith.constant 0 : i32
    %c0_i32_1 = arith.constant 0 : i32
    return %c0_i32, %c0_i32_0 : i32, i32
  }
  func.func @transform_3(%arg0: i32) -> (i32, i32) {
    %c0_i32 = arith.constant 0 : i32
    %c0_i32_0 = arith.constant 0 : i32
    return %arg0, %c0_i32 : i32, i32
  }
}

</mosaic_0001>

<bundles_post_ra>
// kernel: tpu_custom_call.1
= control target key start
LH: loop header
LB: loop body
LE: loop exit
PB: predicated region body
PF: predicated region fallthrough
CT: control target
= control target key end

     0   :  { %8 = vsyncpa [#allocation3], 0  ;;  %s422_s0 = inlined_call_operand.hbm [shape: f32[8,128], index: 0, kind: input, shape index: {}]   ;;  %s423_s1 = inlined_call_operand.hbm [shape: bf16[128,256], index: 1, kind: input, shape index: {}]   ;;  %s424_s2 = inlined_call_operand.vmem [shape: f32[1,256], index: 2, kind: input, shape index: {}]   ;;  %s425_s3 = inlined_call_operand.hbm [shape: f32[8,256], index: 3, kind: output, shape index: {}]  }
   0x1   :  { %9 = vsyncpa [#allocation6], 0 }
   0x2   :  { %10 = vsyncpa [#allocation4], 0  ;;  %s350_s12 = smov [#allocation2]   ;;  %s351_s14 = smov [#allocation5]  }
   0x3   :  { %s17_s13 = sshll.u32 %s350_s12, 4  ;;  %s26_s15 = sshll.u32 %s351_s14, 4  ;;  %s18_s13 = int_to_ptr.vmem [resolvable:$true] %s17_s13  ;;  %s376_s15 = int_to_ptr.vmem [resolvable:$true] %s26_s15 }
   0x4   :  { %s278_s18 = scalar_lea.hbm %s422_s0, 128 }
   0x5   :  { %p279_p0 = scmp.ne.s32.totalorder %s422_s0, %s278_s18  ;;  %p282_p1 = scmp.lt.u32.totalorder %s278_s18, %s422_s0 }
   0x7   :  { %p284_p2 = pnand %p282_p1, %p279_p0 }
   0x9   :  { %287 = shalt.err (!%p284_p2)
}
   0xa   :  { %s288_s23 = scalar_lea.vmem %s18_s13, 128  ;;  %p293_p4 = scmp.lt.s32.totalorder %s18_s13, %s18_s13 }
   0xb   :  { %p289_p3 = scmp.ne.s32.totalorder %s18_s13, %s288_s23  ;;  %p294_p5 = scmp.lt.s32.totalorder %s288_s23, %s288_s23 }
   0xd   :  { %p295_p6 = por %p294_p5, %p293_p4 }
   0xf   :  { %p296_p7 = pnand %p295_p6, %p289_p3 }
  0x11   :  { %299 = shalt.err (!%p296_p7)
}
  0x12   :  { %20 = dma.hbm_to_vmem [thread:$0]  %s422_s0, 128, %s18_s13, [#allocation3]  }
  0x13   :  { %s300_s28 = scalar_lea.hbm %s423_s1, 2048 }
  0x14   :  { %p301_p8 = scmp.ne.s32.totalorder %s423_s1, %s300_s28  ;;  %p304_p9 = scmp.lt.u32.totalorder %s300_s28, %s423_s1 }
  0x16   :  { %p306_p10 = pnand %p304_p9, %p301_p8 }
  0x18   :  { %309 = shalt.err (!%p306_p10)
}
  0x19   :  { %s310_s6 = scalar_lea.vmem %s376_s15, 2048  ;;  %p315_p12 = scmp.lt.s32.totalorder %s376_s15, %s376_s15 }
  0x1a   :  { %p311_p11 = scmp.ne.s32.totalorder %s376_s15, %s310_s6  ;;  %p316_p13 = scmp.lt.s32.totalorder %s310_s6, %s310_s6 }
  0x1c   :  { %p317_p0 = por %p316_p13, %p315_p12 }
  0x1e   :  { %p318_p1 = pnand %p317_p0, %p311_p11 }
  0x20   :  { %321 = shalt.err (!%p318_p1)
}
  0x21   :  { %s352_s0 = smov 128   ;;  %s353_s7 = smov 8  }
  0x22   :  { %32 = dma.hbm_to_vmem [thread:$0]  %s423_s1, 2048, %s376_s15, [#allocation6], %s352_s0, %s352_s0, %s353_s7  }
  0x23   :  { %344 = dma.done.wait [#allocation3], 128  }
  0x24   :  { %345 = vsyncadd [#allocation3], 4294967168 }
  0x25   :  { %346 = dma.done.wait [#allocation6], 2048  }
  0x26   :  { %347 = vsyncadd [#allocation6], 4294965248  ;;  %v354_v0 = vmov 0   ;;  %v248_v1 = vld [vmem:[#allocation5 + $0x4] ss:$8 sps:$4 sm:$0xff]   ;;  %v42_v17 = vld [vmem:[#allocation2] sm:$0xff]  ;;  %v62_v19 = vlaneseq }
  0x27   :  { %184 = vmatprep.mubr.bf16.mxu0 %v354_v0  ;;  %v250_v2 = vld [vmem:[#allocation5] ss:$8 sps:$4 sm:$0xff]   ;;  %152 = vmatprep.subr.bf16.mxu0 %v248_v1  ;;  %v251_v3 = vld [vmem:[#allocation5 + $0x14] ss:$8 sps:$4 sm:$0xff]   ;;  %v253_v4 = vld [vmem:[#allocation5 + $0x10] ss:$8 sps:$4 sm:$0xff]   ;;  %v43_v18 = vpack.c.bf16 %v42_v17, %v42_v17 }
  0x28   :  { %153 = vmatpush1.bf16.msra.mxu0 %v250_v2  ;;  %v254_v5 = vld [vmem:[#allocation5 + $0x24] ss:$8 sps:$4 sm:$0xff]   ;;  %v256_v6 = vld [vmem:[#allocation5 + $0x20] ss:$8 sps:$4 sm:$0xff]   ;;  %v257_v7 = vld [vmem:[#allocation5 + $0x34] ss:$8 sps:$4 sm:$0xff]  }
  0x29   :  { %154 = vmatprep.subr.bf16.mxu0 %v251_v3  ;;  %v259_v8 = vld [vmem:[#allocation5 + $0x30] ss:$8 sps:$4 sm:$0xff]   ;;  %v260_v9 = vld [vmem:[#allocation5 + $0x44] ss:$8 sps:$4 sm:$0xff]   ;;  %v262_v10 = vld [vmem:[#allocation5 + $0x40] ss:$8 sps:$4 sm:$0xff]  }
  0x2a   :  { %v263_v11 = vld [vmem:[#allocation5 + $0x54] ss:$8 sps:$4 sm:$0xff]   ;;  %v265_v12 = vld [vmem:[#allocation5 + $0x50] ss:$8 sps:$4 sm:$0xff]   ;;  %v266_v13 = vld [vmem:[#allocation5 + $0x64] ss:$8 sps:$4 sm:$0xff]  }
  0x2b   :  { %v268_v14 = vld [vmem:[#allocation5 + $0x60] ss:$8 sps:$4 sm:$0xff]   ;;  %v269_v15 = vld [vmem:[#allocation5 + $0x74] ss:$8 sps:$4 sm:$0xff]   ;;  %v271_v16 = vld [vmem:[#allocation5 + $0x70] ss:$8 sps:$4 sm:$0xff]  }
  0x2c   :  { %155 = vmatpush1.bf16.msra.mxu0 %v253_v4  ;;  %v63_v20 = vshrl.u32 %v62_v19, 7  ;;  %v60_v22 = vld [vmem:[%s424_s2] sm:$0x3]  ;;  %s355_s2 = smov [#allocation7]  }
  0x2d   :  { %156 = vmatprep.subr.bf16.mxu0 %v254_v5  ;;  %s216_s11 = sshll.u32 %s355_s2, 4  ;;  %s217_s11 = int_to_ptr.vmem [resolvable:$true] %s216_s11 }
  0x2e   :  { %v64_v21 = vsub.s32 0, %v63_v20  ;;  %v68_v23 = vsub.s32 1, %v63_v20  ;;  %s322_s12 = scalar_lea.vmem %s217_s11, 256  ;;  %p327_p3 = scmp.lt.s32.totalorder %s217_s11, %s217_s11 }
  0x2f   :  { %p323_p2 = scmp.ne.s32.totalorder %s217_s11, %s322_s12  ;;  %p328_p4 = scmp.lt.s32.totalorder %s322_s12, %s322_s12 }
  0x30   :  { %157 = vmatpush1.bf16.msra.mxu0 %v256_v6  ;;  %v65_v24 = vrot.slane %v60_v22, %v64_v21  ;;  %v69_v25 = vrot.slane %v60_v22, %v68_v23 }
  0x31   :  { %158 = vmatprep.subr.bf16.mxu0 %v257_v7  ;;  %p329_p5 = por %p328_p4, %p327_p3 }
  0x33   :  { %p330_p6 = pnand %p329_p5, %p323_p2 }
  0x34   :  { %159 = vmatpush1.bf16.msra.mxu0 %v259_v8 }
  0x35   :  { %160 = vmatprep.subr.bf16.mxu0 %v260_v9 }
  0x38   :  { %161 = vmatpush1.bf16.msra.mxu0 %v262_v10 }
  0x39   :  { %162 = vmatprep.subr.bf16.mxu0 %v263_v11 }
  0x3c   :  { %163 = vmatpush1.bf16.msra.mxu0 %v265_v12 }
  0x3d   :  { %164 = vmatprep.subr.bf16.mxu0 %v266_v13 }
  0x40   :  { %165 = vmatpush1.bf16.msra.mxu0 %v268_v14 }
  0x41   :  { %166 = vmatprep.subr.bf16.mxu0 %v269_v15 }
  0x44   :  { %167 = vmatpush1.bf16.msra.mxu0 %v271_v16 }
  0x47   :  { %185 = vmatmul.mubr.bf16.vlgmr.msra.gmra.mrb[0].mxu0 %v43_v18 }
 0x11a   :  { %v186_v26 = vpop.f32.mrb[0].mxu0 }
 0x11b   :  { %v187_v27 = vadd.f32 %v186_v26, %v65_v24  ;;  %v188_v28 = vpop.f32.mrb[1].mxu0 }
 0x11c   :  { %v189_v29 = vadd.f32 %v188_v28, %v69_v25  ;;  %v190_v30 = vpop.f32.mrb[2].mxu0 }
 0x11d   :  { %v191_v31 = vpop.f32.mrb[3].mxu0 }
 0x11e   :  { %v193_v32 = vmax.f32 %v187_v27, %v189_v29 }
 0x120   :  { %194 = vmax.xlane.f32.xlu0 %v193_v32 }
 0x1ad   :  { %v195_v33 = vpop.xlane.xlu0 %194 }
 0x1ae   :  { %v196_v34 = vsub.f32 %v187_v27, %v195_v33  ;;  %v197_v35 = vsub.f32 %v189_v29, %v195_v33 }
 0x1b0   :  { %v198_v36 = vmul.f32 1.442695, %v196_v34  ;;  %v200_v37 = vmul.f32 1.442695, %v197_v35 }
 0x1b2   :  { %272 = vpow2.f32 %v198_v36 }
 0x1b3   :  { %274 = vpow2.f32 %v200_v37 }
 0x1bc   :  { %v273_v38 = vpop.eup %272 }
 0x1bd   :  { %v275_v39 = vpop.eup %274 }
 0x1be   :  { %v202_v40 = vadd.f32 %v275_v39, %v273_v38 }
 0x1c0   :  { %203 = vadd.xlane.f32.xlu0 %v202_v40 }
 0x24d   :  { %v204_v41 = vpop.xlane.xlu0 %203 }
 0x24e   :  { %276 = vrcp.f32 %v204_v41 }
 0x258   :  { %v277_v42 = vpop.eup %276 }
 0x259   :  { %v206_v43 = vmul.f32 %v277_v42, %v273_v38  ;;  %v207_v44 = vmul.f32 %v277_v42, %v275_v39 }
 0x25b   :  { %208 = vst [vmem:[#allocation7] sm:$0xff] %v206_v43  ;;  %209 = vst [vmem:[#allocation7 + $0x8] sm:$0xff] %v207_v44 }
 0x25c   :  { %333 = shalt.err (!%p330_p6)
}
 0x25d   :  { %s334_s15 = scalar_lea.hbm %s425_s3, 256 }
 0x25e   :  { %p335_p7 = scmp.ne.s32.totalorder %s425_s3, %s334_s15  ;;  %p338_p8 = scmp.lt.u32.totalorder %s334_s15, %s425_s3 }
 0x260   :  { %p340_p9 = pnand %p338_p8, %p335_p7 }
 0x262   :  { %343 = shalt.err (!%p340_p9)
}
 0x263   :  { %219 = dma.vmem_to_hbm [thread:$0]  %s217_s11, 256, %s425_s3, [#allocation4]  }
 0x264   :  { %348 = dma.done.wait [#allocation4], 256  }
 0x265   :  { %349 = vsyncadd [#allocation4], 4294967040 }
 0x266   :  { %223 = vsyncpa [#allocation3], 1 }
 0x267   :  { %224 = vsyncpa [#allocation6], 1 }
 0x268   :  { %225 = vsyncpa [#allocation4], 1 }

// kernel: tpu_custom_call.1
= control target key start
LH: loop header
LB: loop body
LE: loop exit
PB: predicated region body
PF: predicated region fallthrough
CT: control target
= control target key end

     0   :  { %8 = vsyncpa [#allocation3], 0  ;;  %s422_s0 = inlined_call_operand.hbm [shape: f32[8,128], index: 0, kind: input, shape index: {}]   ;;  %s423_s1 = inlined_call_operand.hbm [shape: bf16[128,256], index: 1, kind: input, shape index: {}]   ;;  %s424_s2 = inlined_call_operand.vmem [shape: f32[1,256], index: 2, kind: input, shape index: {}]   ;;  %s425_s3 = inlined_call_operand.hbm [shape: f32[8,256], index: 3, kind: output, shape index: {}]  }
   0x1   :  { %9 = vsyncpa [#allocation6], 0 }
   0x2   :  { %10 = vsyncpa [#allocation4], 0  ;;  %s350_s12 = smov [#allocation2]   ;;  %s351_s14 = smov [#allocation5]  }
   0x3   :  { %s17_s13 = sshll.u32 %s350_s12, 4  ;;  %s26_s15 = sshll.u32 %s351_s14, 4  ;;  %s18_s13 = int_to_ptr.vmem [resolvable:$true] %s17_s13  ;;  %s376_s15 = int_to_ptr.vmem [resolvable:$true] %s26_s15 }
   0x4   :  { %s278_s18 = scalar_lea.hbm %s422_s0, 128 }
   0x5   :  { %p279_p0 = scmp.ne.s32.totalorder %s422_s0, %s278_s18  ;;  %p282_p1 = scmp.lt.u32.totalorder %s278_s18, %s422_s0 }
   0x7   :  { %p284_p2 = pnand %p282_p1, %p279_p0 }
   0x9   :  { %287 = shalt.err (!%p284_p2)
}
   0xa   :  { %s288_s23 = scalar_lea.vmem %s18_s13, 128  ;;  %p293_p4 = scmp.lt.s32.totalorder %s18_s13, %s18_s13 }
   0xb   :  { %p289_p3 = scmp.ne.s32.totalorder %s18_s13, %s288_s23  ;;  %p294_p5 = scmp.lt.s32.totalorder %s288_s23, %s288_s23 }
   0xd   :  { %p295_p6 = por %p294_p5, %p293_p4 }
   0xf   :  { %p296_p7 = pnand %p295_p6, %p289_p3 }
  0x11   :  { %299 = shalt.err (!%p296_p7)
}
  0x12   :  { %20 = dma.hbm_to_vmem [thread:$0]  %s422_s0, 128, %s18_s13, [#allocation3]  }
  0x13   :  { %s300_s28 = scalar_lea.hbm %s423_s1, 2048 }
  0x14   :  { %p301_p8 = scmp.ne.s32.totalorder %s423_s1, %s300_s28  ;;  %p304_p9 = scmp.lt.u32.totalorder %s300_s28, %s423_s1 }
  0x16   :  { %p306_p10 = pnand %p304_p9, %p301_p8 }
  0x18   :  { %309 = shalt.err (!%p306_p10)
}
  0x19   :  { %s310_s6 = scalar_lea.vmem %s376_s15, 2048  ;;  %p315_p12 = scmp.lt.s32.totalorder %s376_s15, %s376_s15 }
  0x1a   :  { %p311_p11 = scmp.ne.s32.totalorder %s376_s15, %s310_s6  ;;  %p316_p13 = scmp.lt.s32.totalorder %s310_s6, %s310_s6 }
  0x1c   :  { %p317_p0 = por %p316_p13, %p315_p12 }
  0x1e   :  { %p318_p1 = pnand %p317_p0, %p311_p11 }
  0x20   :  { %321 = shalt.err (!%p318_p1)
}
  0x21   :  { %s352_s0 = smov 128   ;;  %s353_s7 = smov 8  }
  0x22   :  { %32 = dma.hbm_to_vmem [thread:$0]  %s423_s1, 2048, %s376_s15, [#allocation6], %s352_s0, %s352_s0, %s353_s7  }
  0x23   :  { %344 = dma.done.wait [#allocation3], 128  }
  0x24   :  { %345 = vsyncadd [#allocation3], 4294967168 }
  0x25   :  { %346 = dma.done.wait [#allocation6], 2048  }
  0x26   :  { %347 = vsyncadd [#allocation6], 4294965248  ;;  %v354_v0 = vmov 0   ;;  %v248_v1 = vld [vmem:[#allocation5 + $0x4] ss:$8 sps:$4 sm:$0xff]   ;;  %v42_v17 = vld [vmem:[#allocation2] sm:$0xff]  ;;  %v62_v19 = vlaneseq }
  0x27   :  { %184 = vmatprep.mubr.bf16.mxu0 %v354_v0  ;;  %v250_v2 = vld [vmem:[#allocation5] ss:$8 sps:$4 sm:$0xff]   ;;  %152 = vmatprep.subr.bf16.mxu0 %v248_v1  ;;  %v251_v3 = vld [vmem:[#allocation5 + $0x14] ss:$8 sps:$4 sm:$0xff]   ;;  %v253_v4 = vld [vmem:[#allocation5 + $0x10] ss:$8 sps:$4 sm:$0xff]   ;;  %v43_v18 = vpack.c.bf16 %v42_v17, %v42_v17 }
  0x28   :  { %153 = vmatpush1.bf16.msra.mxu0 %v250_v2  ;;  %v254_v5 = vld [vmem:[#allocation5 + $0x24] ss:$8 sps:$4 sm:$0xff]   ;;  %v256_v6 = vld [vmem:[#allocation5 + $0x20] ss:$8 sps:$4 sm:$0xff]   ;;  %v257_v7 = vld [vmem:[#allocation5 + $0x34] ss:$8 sps:$4 sm:$0xff]  }
  0x29   :  { %154 = vmatprep.subr.bf16.mxu0 %v251_v3  ;;  %v259_v8 = vld [vmem:[#allocation5 + $0x30] ss:$8 sps:$4 sm:$0xff]   ;;  %v260_v9 = vld [vmem:[#allocation5 + $0x44] ss:$8 sps:$4 sm:$0xff]   ;;  %v262_v10 = vld [vmem:[#allocation5 + $0x40] ss:$8 sps:$4 sm:$0xff]  }
  0x2a   :  { %v263_v11 = vld [vmem:[#allocation5 + $0x54] ss:$8 sps:$4 sm:$0xff]   ;;  %v265_v12 = vld [vmem:[#allocation5 + $0x50] ss:$8 sps:$4 sm:$0xff]   ;;  %v266_v13 = vld [vmem:[#allocation5 + $0x64] ss:$8 sps:$4 sm:$0xff]  }
  0x2b   :  { %v268_v14 = vld [vmem:[#allocation5 + $0x60] ss:$8 sps:$4 sm:$0xff]   ;;  %v269_v15 = vld [vmem:[#allocation5 + $0x74] ss:$8 sps:$4 sm:$0xff]   ;;  %v271_v16 = vld [vmem:[#allocation5 + $0x70] ss:$8 sps:$4 sm:$0xff]  }
  0x2c   :  { %155 = vmatpush1.bf16.msra.mxu0 %v253_v4  ;;  %v63_v20 = vshrl.u32 %v62_v19, 7  ;;  %v60_v22 = vld [vmem:[%s424_s2] sm:$0x3]  ;;  %s355_s2 = smov [#allocation7]  }
  0x2d   :  { %156 = vmatprep.subr.bf16.mxu0 %v254_v5  ;;  %s216_s11 = sshll.u32 %s355_s2, 4  ;;  %s217_s11 = int_to_ptr.vmem [resolvable:$true] %s216_s11 }
  0x2e   :  { %v64_v21 = vsub.s32 0, %v63_v20  ;;  %v68_v23 = vsub.s32 1, %v63_v20  ;;  %s322_s12 = scalar_lea.vmem %s217_s11, 256  ;;  %p327_p3 = scmp.lt.s32.totalorder %s217_s11, %s217_s11 }
  0x2f   :  { %p323_p2 = scmp.ne.s32.totalorder %s217_s11, %s322_s12  ;;  %p328_p4 = scmp.lt.s32.totalorder %s322_s12, %s322_s12 }
  0x30   :  { %157 = vmatpush1.bf16.msra.mxu0 %v256_v6  ;;  %v65_v24 = vrot.slane %v60_v22, %v64_v21  ;;  %v69_v25 = vrot.slane %v60_v22, %v68_v23 }
  0x31   :  { %158 = vmatprep.subr.bf16.mxu0 %v257_v7  ;;  %p329_p5 = por %p328_p4, %p327_p3 }
  0x33   :  { %p330_p6 = pnand %p329_p5, %p323_p2 }
  0x34   :  { %159 = vmatpush1.bf16.msra.mxu0 %v259_v8 }
  0x35   :  { %160 = vmatprep.subr.bf16.mxu0 %v260_v9 }
  0x38   :  { %161 = vmatpush1.bf16.msra.mxu0 %v262_v10 }
  0x39   :  { %162 = vmatprep.subr.bf16.mxu0 %v263_v11 }
  0x3c   :  { %163 = vmatpush1.bf16.msra.mxu0 %v265_v12 }
  0x3d   :  { %164 = vmatprep.subr.bf16.mxu0 %v266_v13 }
  0x40   :  { %165 = vmatpush1.bf16.msra.mxu0 %v268_v14 }
  0x41   :  { %166 = vmatprep.subr.bf16.mxu0 %v269_v15 }
  0x44   :  { %167 = vmatpush1.bf16.msra.mxu0 %v271_v16 }
  0x47   :  { %185 = vmatmul.mubr.bf16.vlgmr.msra.gmra.mrb[0].mxu0 %v43_v18 }
 0x11a   :  { %v186_v26 = vpop.f32.mrb[0].mxu0 }
 0x11b   :  { %v187_v27 = vadd.f32 %v186_v26, %v65_v24  ;;  %v188_v28 = vpop.f32.mrb[1].mxu0 }
 0x11c   :  { %v189_v29 = vadd.f32 %v188_v28, %v69_v25  ;;  %v190_v30 = vpop.f32.mrb[2].mxu0 }
 0x11d   :  { %v191_v31 = vpop.f32.mrb[3].mxu0 }
 0x11e   :  { %v193_v32 = vmax.f32 %v187_v27, %v189_v29 }
 0x120   :  { %194 = vmax.xlane.f32.xlu0 %v193_v32 }
 0x1ad   :  { %v195_v33 = vpop.xlane.xlu0 %194 }
 0x1ae   :  { %v196_v34 = vsub.f32 %v187_v27, %v195_v33  ;;  %v197_v35 = vsub.f32 %v189_v29, %v195_v33 }
 0x1b0   :  { %v198_v36 = vmul.f32 1.442695, %v196_v34  ;;  %v200_v37 = vmul.f32 1.442695, %v197_v35 }
 0x1b2   :  { %272 = vpow2.f32 %v198_v36 }
 0x1b3   :  { %274 = vpow2.f32 %v200_v37 }
 0x1bc   :  { %v273_v38 = vpop.eup %272 }
 0x1bd   :  { %v275_v39 = vpop.eup %274 }
 0x1be   :  { %v202_v40 = vadd.f32 %v275_v39, %v273_v38 }
 0x1c0   :  { %203 = vadd.xlane.f32.xlu0 %v202_v40 }
 0x24d   :  { %v204_v41 = vpop.xlane.xlu0 %203 }
 0x24e   :  { %276 = vrcp.f32 %v204_v41 }
 0x258   :  { %v277_v42 = vpop.eup %276 }
 0x259   :  { %v206_v43 = vmul.f32 %v277_v42, %v273_v38  ;;  %v207_v44 = vmul.f32 %v277_v42, %v275_v39 }
 0x25b   :  { %208 = vst [vmem:[#allocation7] sm:$0xff] %v206_v43  ;;  %209 = vst [vmem:[#allocation7 + $0x8] sm:$0xff] %v207_v44 }
 0x25c   :  { %333 = shalt.err (!%p330_p6)
}
 0x25d   :  { %s334_s15 = scalar_lea.hbm %s425_s3, 256 }
 0x25e   :  { %p335_p7 = scmp.ne.s32.totalorder %s425_s3, %s334_s15  ;;  %p338_p8 = scmp.lt.u32.totalorder %s334_s15, %s425_s3 }
 0x260   :  { %p340_p9 = pnand %p338_p8, %p335_p7 }
 0x262   :  { %343 = shalt.err (!%p340_p9)
}
 0x263   :  { %219 = dma.vmem_to_hbm [thread:$0]  %s217_s11, 256, %s425_s3, [#allocation4]  }
 0x264   :  { %348 = dma.done.wait [#allocation4], 256  }
 0x265   :  { %349 = vsyncadd [#allocation4], 4294967040 }
 0x266   :  { %223 = vsyncpa [#allocation3], 1 }
 0x267   :  { %224 = vsyncpa [#allocation6], 1 }
 0x268   :  { %225 = vsyncpa [#allocation4], 1 }

</bundles_post_ra>
